<compile_context>
chip_gen: v7x
topology: tpu7x:2x2x1
jax: 0.10.0
libtpu: 0.0.40
codegen_flags: <defaults>
</compile_context>

<pallas_src>
import functools

import jax
import jax.numpy as jnp
from jax.experimental import pallas as pl
from jax.experimental.pallas import tpu as pltpu

_LANE = 128


def _sinlu_kernel(ab_ref, x_ref, o_ref):
    # ab_ref: (2,) f32 scalars in SMEM ([a, b]); x_ref / o_ref: VMEM tiles.
    a = ab_ref[0]
    b = ab_ref[1]
    # Compute in f32. (bf16-native compute is an option on v6e/v7x — bf16
    # VPU/EUP — but f32 keeps v5e correct and matches the reference tightly.)
    xf = x_ref[...].astype(jnp.float32)
    # tanh-form sigmoid: single EUP op + a VPU fma (vs exp + reciprocal).
    sig = 0.5 * (jnp.tanh(0.5 * xf) + 1.0)
    out = sig * (xf + a * jnp.sin(b * xf))  # sin on EUP, rest on VPU
    o_ref[...] = out.astype(o_ref.dtype)


def _tpu_vmem_bytes():
    """Physical VMEM per TensorCore; conservative fallback if query fails."""
    try:
        info = pltpu.get_tpu_info()
        cap = getattr(info, "vmem_capacity_bytes", None)
        if cap:
            return int(cap)
    except Exception:
        pass
    return 64 << 20  # assume v7x (smallest VMEM) if we cannot query


def _sinlu_impl(x, a, b):
    orig_shape = x.shape
    orig_dtype = x.dtype
    total = int(x.size)

    itemsize = jnp.dtype(orig_dtype).itemsize
    # dtype-aware sublane multiple: 8 for 4-byte, 16 for 2-byte, 32 for 1-byte.
    sublane = max(8, 32 // itemsize)
    lane = _LANE

    vmem_cap = _tpu_vmem_bytes()
    # ~8 MiB tiles when VMEM is small (v7x, 64 MiB), ~16 MiB when large
    # (v5e/v6e, 128 MiB).  Double-buffered in+out = 4x tile, well in budget.
    target_tile_bytes = (8 << 20) if vmem_cap <= (80 << 20) else (16 << 20)

    # Lane-dense (rows, 128) slab.  Pad only when total isn't a multiple of
    # 128 (tiny tail, <= 127 elements) — the common NN-activation case needs
    # no copy at all.
    rows = pl.cdiv(total, lane)
    lane_padded_total = rows * lane
    flat = x.reshape(-1)
    if lane_padded_total != total:
        # TODO(synk): this fallback copies the array; only hit when
        # total % 128 != 0.
        flat = jnp.pad(flat, (0, lane_padded_total - total))
    x2 = flat.reshape(rows, lane)

    # Rows per grid step.
    target_rows = max(
        sublane, (target_tile_bytes // (lane * itemsize)) // sublane * sublane
    )
    steps = max(1, pl.cdiv(rows, target_rows))
    # v7x has 2 TensorCores: for non-tiny inputs keep an even, >=2-step grid
    # so "parallel" sharding balances both cores.  Neutral on v5e/v6e.
    if rows * lane * itemsize >= (2 << 20):
        steps = max(2, steps)
        if steps % 2:
            steps += 1
    tr = pl.cdiv(rows, steps)
    tr = ((tr + sublane - 1) // sublane) * sublane
    tr = min(tr, ((rows + sublane - 1) // sublane) * sublane)
    grid_steps = pl.cdiv(rows, tr)
    # The last block may be partial: Pallas masks OOB writes; OOB reads are
    # garbage but harmless for this elementwise op.

    # Pack the two scalar parameters into one 1-D SMEM array.
    ab = jnp.concatenate([
        jnp.asarray(a, jnp.float32).reshape(1),
        jnp.asarray(b, jnp.float32).reshape(1),
    ])

    # Scoped VMEM: in + out double-buffered (4x tile) + headroom, clamped to
    # ~75% of physical VMEM (48 MiB on v7x, 96 MiB on v5e/v6e).
    tile_bytes = tr * lane * itemsize
    vmem_limit = int(min(0.75 * vmem_cap, max(32 << 20, 6 * tile_bytes)))

    out2 = pl.pallas_call(
        _sinlu_kernel,
        out_shape=jax.ShapeDtypeStruct((rows, lane), orig_dtype),
        grid=(grid_steps,),
        in_specs=[
            pl.BlockSpec(memory_space=pltpu.SMEM),        # [a, b] scalars
            pl.BlockSpec((tr, lane), lambda i: (i, 0)),   # x tile
        ],
        out_specs=pl.BlockSpec((tr, lane), lambda i: (i, 0)),
        compiler_params=pltpu.CompilerParams(
            dimension_semantics=("parallel",),
            vmem_limit_bytes=vmem_limit,
        ),
    )(ab, x2)

    out_flat = out2.reshape(-1)
    if lane_padded_total != total:
        out_flat = out_flat[:total]
    return out_flat.reshape(orig_shape)


# Jitted entry point: reshapes become bitcasts, single dispatch per call.
sinlu = jax.jit(_sinlu_impl)


def sinlu_ref(x, a, b):
    xf = x.astype(jnp.float32)
    return (jax.nn.sigmoid(xf) * (xf + a * jnp.sin(b * xf))).astype(x.dtype)


if __name__ == "__main__":
    key = jax.random.PRNGKey(0)
    # NCHW input, same convention as the PyTorch module would receive.
    x = jax.random.normal(key, (2, 4, 16, 16), dtype=jnp.float32)

    # Deterministic parameter init matching nn.Parameter(torch.ones(1)).
    a = jnp.ones((1,), jnp.float32)
    b = jnp.ones((1,), jnp.float32)

    out = sinlu(x, a, b)
    out = jax.block_until_ready(out)

    ref = sinlu_ref(x, a[0], b[0])
    assert out.shape == x.shape and out.dtype == x.dtype
    assert jnp.allclose(out, ref, atol=1e-5, rtol=1e-5)
    print("KERNEL_OK")
</pallas_src>

<mosaic_0001>
module attributes {stable_mosaic.version = 11 : i64} {
  func.func @_sinlu_kernel(%arg0: i32, %arg1: memref<2xf32, #tpu.memory_space<smem>>, %arg2: memref<16x128xf32, #tpu.memory_space<vmem>>, %arg3: memref<16x128xf32, #tpu.memory_space<vmem>>) attributes {dimension_semantics = [#tpu.dimension_semantics<parallel>], iteration_bounds = array<i64: 1>, scalar_prefetch = 0 : i64, scratch_operands = 0 : i64, tpu.core_type = #tpu.core_type<tc>, window_params = [{transform_indices = @transform_0, window_bounds = array<i64: 2>}, {transform_indices = @transform_1, window_bounds = array<i64: 16, 128>}, {transform_indices = @transform_2, window_bounds = array<i64: 16, 128>}]} {
    %c0 = arith.constant 0 : index
    %0 = memref.load %arg1[%c0] : memref<2xf32, #tpu.memory_space<smem>>
    %c1 = arith.constant 1 : index
    %1 = memref.load %arg1[%c1] : memref<2xf32, #tpu.memory_space<smem>>
    %c0_0 = arith.constant 0 : index
    %c0_1 = arith.constant 0 : index
    %2 = vector.load %arg2[%c0_0, %c0_1] : memref<16x128xf32, #tpu.memory_space<vmem>>, vector<16x128xf32>
    %cst = arith.constant 5.000000e-01 : f32
    %3 = vector.broadcast %cst : f32 to vector<16x128xf32>
    %4 = arith.mulf %3, %2 : vector<16x128xf32>
    %5 = math.tanh %4 : vector<16x128xf32>
    %cst_2 = arith.constant 1.000000e+00 : f32
    %6 = vector.broadcast %cst_2 : f32 to vector<16x128xf32>
    %7 = arith.addf %5, %6 : vector<16x128xf32>
    %cst_3 = arith.constant 5.000000e-01 : f32
    %8 = vector.broadcast %cst_3 : f32 to vector<16x128xf32>
    %9 = arith.mulf %8, %7 : vector<16x128xf32>
    %10 = vector.broadcast %1 : f32 to vector<16x128xf32>
    %11 = arith.mulf %10, %2 : vector<16x128xf32>
    %12 = math.sin %11 : vector<16x128xf32>
    %13 = vector.broadcast %0 : f32 to vector<16x128xf32>
    %14 = arith.mulf %13, %12 : vector<16x128xf32>
    %15 = arith.addf %2, %14 : vector<16x128xf32>
    %16 = arith.mulf %9, %15 : vector<16x128xf32>
    %c0_4 = arith.constant 0 : index
    %c0_5 = arith.constant 0 : index
    %17 = vector.load %arg3[%c0_4, %c0_5] : memref<16x128xf32, #tpu.memory_space<vmem>>, vector<16x128xf32>
    tpu.vector_store %arg3[%c0_4, %c0_5], %16 {strides = array<i32>} : memref<16x128xf32, #tpu.memory_space<vmem>>, vector<16x128xf32>,
    return
  }
  func.func @transform_0(%arg0: i32) -> i32 {
    %c0_i32 = arith.constant 0 : i32
    %c0_i32_0 = arith.constant 0 : i32
    return %c0_i32 : i32
  }
  func.func @transform_1(%arg0: i32) -> (i32, i32) {
    %c0_i32 = arith.constant 0 : i32
    %c0_i32_0 = arith.constant 0 : i32
    return %arg0, %c0_i32 : i32, i32
  }
  func.func @transform_2(%arg0: i32) -> (i32, i32) {
    %c0_i32 = arith.constant 0 : i32
    %c0_i32_0 = arith.constant 0 : i32
    return %arg0, %c0_i32 : i32, i32
  }
}

</mosaic_0001>

<bundles_post_ra>
// kernel: _sinlu_impl.1
= control target key start
LH: loop header
LB: loop body
LE: loop exit
PB: predicated region body
PF: predicated region fallthrough
CT: control target
= control target key end

     0   :  { %7 = vsyncpa [#allocation3], 0  ;;  %s439_s0 = inlined_call_operand.vmem [shape: f32[2], index: 0, kind: input, shape index: {}]   ;;  %s440_s1 = inlined_call_operand.vmem [shape: f32[16,128], index: 1, kind: input, shape index: {}]   ;;  %s441_s2 = inlined_call_operand.vmem [shape: f32[16,128], index: 2, kind: output, shape index: {}]  }
   0x1   :  { %s14_s11 = sshll.u32 %s439_s0, 4  ;;  %s15_s11 = int_to_ptr.vmem [resolvable:$true] %s14_s11 }
   0x2   :  { %s297_s12 = scalar_lea.vmem %s15_s11, 16  ;;  %p302_p1 = scmp.lt.s32.totalorder %s15_s11, %s15_s11 }
   0x3   :  { %p298_p0 = scmp.ne.s32.totalorder %s15_s11, %s297_s12  ;;  %p303_p2 = scmp.lt.s32.totalorder %s297_s12, %s297_s12 }
   0x5   :  { %p304_p3 = por %p303_p2, %p302_p1 }
   0x7   :  { %p305_p4 = pnand %p304_p3, %p298_p0 }
   0x9   :  { %308 = shalt.err (!%p305_p4)
}
   0xa   :  { %s311_s13 = smov [#allocation2]  }
   0xb   :  { %17 = dma.vmem_to_smem %s15_s11, 16, %s311_s13, [#allocation3]  }
   0xc   :  { %309 = dma.done.wait [#allocation3], 16  }
   0xd   :  { %310 = vsyncadd [#allocation3], 4294967280 }
   0xe   :  { %23 = sfence }
   0xf   :  { %s261_s14 = sld [smem:[#allocation2 + $0x1]]  ;;  %v339_v0 = vld [vmem:[%s440_s1] sm:$0xff]  ;;  %v344_v1 = vld [vmem:[%s440_s1 + $0x8] sm:$0xff]  ;;  %v312_v27 = vmov 683565275   ;;  %s421_s1 = sld [smem:[#allocation2]] }
  0x10   :  { %v313_v29 = vmov 2475754826   ;;  %v314_v31 = vmov 2131351028   ;;  %v315_v33 = vmov 2102212464  }
  0x11   :  { %v316_v35 = vmov 920167782   ;;  %v317_v43 = vmov 1326507024  }
  0x15   :  { %v36_v2 = vstv %s261_s14 }
  0x16   :  { %v347_v3 = vmul.f32 %v36_v2, %v339_v0  ;;  %v350_v4 = vmul.f32 %v36_v2, %v344_v1 }
  0x18   :  { %v39_v5 = vand.u32 2147483647, %v347_v3  ;;  %v42_v6 = vand.u32 2139095040, %v347_v3  ;;  %v143_v7 = vand.u32 2147483647, %v350_v4  ;;  %v146_v8 = vand.u32 2139095040, %v350_v4 }
  0x19   :  { %vm41_vm14 = vcmp.lt.s32.totalorder %v347_v3, 0 }
  0x1a   :  { %v43_v9 = vshrl.u32 %v42_v6, 23  ;;  %v46_v10 = vand.u32 8388607, %v39_v5  ;;  %v147_v11 = vshrl.u32 %v146_v8, 23  ;;  %v150_v12 = vand.u32 8388607, %v143_v7 }
  0x1b   :  { %vm40_vm15 = vcmp.le.f32.partialorder %v39_v5, 0.7853982 }
  0x1c   :  { %v262_v13 = vadd.s32 4294967169, %v43_v9  ;;  %v266_v14 = vadd.s32 4294967169, %v147_v11  ;;  %v47_v16 = vor.u32 8388608, %v46_v10  ;;  %v151_v17 = vor.u32 8388608, %v150_v12 }
  0x1e   :  { %v49_v15 = vadd.s32 1, %v262_v13  ;;  %v153_v18 = vadd.s32 1, %v266_v14  ;;  %v360_v23 = vshll.u32 %v47_v16, 8  ;;  %v362_v25 = vshll.u32 %v151_v17, 8 }
  0x20   :  { %vm50_vm0 = vcmp.gt.s32.totalorder %v49_v15, 0  ;;  %vm154_vm1 = vcmp.gt.s32.totalorder %v153_v18, 0 }
  0x21   :  { %v51_v19 = vsel %vm50_vm0, %v49_v15, 0  ;;  %v155_v22 = vsel %vm154_vm1, %v153_v18, 0  ;;  %vm145_vm0 = vcmp.lt.s32.totalorder %v350_v4, 0  ;;  %vm417_vm1 = vcmp.le.f32.partialorder %v143_v7, 0.7853982 }
  0x22   :  { %v52_v20 = vshrl.u32 %v51_v19, 5  ;;  %v53_v21 = vand.u32 31, %v51_v19  ;;  %v157_v24 = vand.u32 31, %v155_v22  ;;  %v364_v37 = vshrl.u32 %v155_v22, 5 }
  0x24   :  { %v54_v26 = vsub.s32 32, %v53_v21  ;;  %v56_v28 = vshll.u32 %v312_v27, %v53_v21  ;;  %v59_v30 = vshll.u32 %v313_v29, %v53_v21  ;;  %v62_v32 = vshll.u32 %v314_v31, %v53_v21 }
  0x25   :  { %v65_v34 = vshll.u32 %v315_v33, %v53_v21  ;;  %v68_v36 = vshll.u32 %v316_v35, %v53_v21  ;;  %vm71_vm2 = vcmp.lt.s32.totalorder %v52_v20, 1  ;;  %vm72_vm3 = vcmp.lt.s32.totalorder %v52_v20, 2 }
  0x26   :  { %v55_v38 = vshrl.u32 %v312_v27, %v54_v26  ;;  %v57_v39 = vshrl.u32 %v313_v29, %v54_v26  ;;  %v60_v40 = vshrl.u32 %v314_v31, %v54_v26  ;;  %v63_v41 = vshrl.u32 %v315_v33, %v54_v26 }
  0x27   :  { %v66_v42 = vshrl.u32 %v316_v35, %v54_v26  ;;  %v69_v44 = vshrl.u32 %v317_v43, %v54_v26  ;;  %vm74_vm4 = vcmp.lt.s32.totalorder %v52_v20, 4  ;;  %v158_v48 = vsub.s32 32, %v157_v24 }
  0x28   :  { %v58_v45 = vor.u32 %v57_v39, %v56_v28  ;;  %v61_v46 = vor.u32 %v60_v40, %v59_v30  ;;  %v64_v47 = vor.u32 %v63_v41, %v62_v32  ;;  %vm73_vm5 = vcmp.lt.s32.totalorder %v52_v20, 3 }
  0x29   :  { %v67_v49 = vor.u32 %v66_v42, %v65_v34  ;;  %v70_v50 = vor.u32 %v69_v44, %v68_v36  ;;  %v160_v51 = vshll.u32 %v312_v27, %v157_v24  ;;  %v163_v59 = vshll.u32 %v313_v29, %v157_v24 }
  0x2a   :  { %v75_v52 = vsel %vm71_vm2, %v55_v38, %v58_v45  ;;  %v76_v53 = vsel %vm74_vm4, %v64_v47, 2102212464  ;;  %v79_v54 = vsel %vm71_vm2, %v58_v45, %v61_v46  ;;  %v83_v55 = vsel %vm71_vm2, %v61_v46, %v64_v47 }
  0x2b   :  { %v77_v56 = vsel %vm73_vm5, %v61_v46, %v76_v53  ;;  %v80_v57 = vsel %vm74_vm4, %v67_v49, 920167782  ;;  %v84_v58 = vsel %vm74_vm4, %v70_v50, 1326507024  ;;  %v159_v62 = vshrl.u32 %v312_v27, %v158_v48 }
  0x2c   :  { %v81_v60 = vsel %vm73_vm5, %v64_v47, %v80_v57  ;;  %v85_v61 = vsel %vm73_vm5, %v67_v49, %v84_v58  ;;  %v161_v63 = vshrl.u32 %v313_v29, %v158_v48  ;;  %v78_v2 = vsel %vm72_vm3, %v75_v52, %v77_v56 }
  0x2d   :  { %v82_v6 = vsel %vm72_vm3, %v79_v54, %v81_v60  ;;  %v86_v8 = vsel %vm72_vm3, %v83_v55, %v85_v61  ;;  %v164_v9 = vshrl.u32 %v314_v31, %v158_v48  ;;  %v166_v16 = vshll.u32 %v314_v31, %v157_v24 }
  0x2e   :  { %v373_v10 = vmul.u32.u64.low %v360_v23, %v86_v8  ;;  %v374_v11 = vmul.u32.u64.high %v360_v23, %v86_v8, %v373_v10  ;;  %v377_v12 = vmul.u32.u64.low %v360_v23, %v82_v6  ;;  %v378_v13 = vmul.u32.u64.high %v360_v23, %v82_v6, %v377_v12 }
  0x2f   :  { %v162_v14 = vor.u32 %v161_v63, %v160_v51  ;;  %v165_v15 = vor.u32 %v164_v9, %v163_v59  ;;  %v167_v17 = vshrl.u32 %v315_v33, %v158_v48  ;;  %v169_v18 = vshll.u32 %v315_v33, %v157_v24 }
  0x30   :  { %v170_v19 = vshrl.u32 %v316_v35, %v158_v48  ;;  %v172_v21 = vshll.u32 %v316_v35, %v157_v24  ;;  %v173_v22 = vshrl.u32 %v317_v43, %v158_v48  ;;  %v94_v20 = vmul.u32 %v360_v23, %v78_v2 }
  0x31   :  { %v168_v26 = vor.u32 %v167_v17, %v166_v16  ;;  %vm175_vm6 = vcmp.lt.s32.totalorder %v364_v37, 1  ;;  %vm176_vm7 = vcmp.lt.s32.totalorder %v364_v37, 2  ;;  %vm96_vm8 = vc.u32 %v374_v11, %v377_v12 }
  0x32   :  { %v97_v27 = vadd.s32 1, %v378_v13  ;;  %v171_v28 = vor.u32 %v170_v19, %v169_v18  ;;  %vm177_vm9 = vcmp.lt.s32.totalorder %v364_v37, 3  ;;  %v174_v29 = vor.u32 %v173_v22, %v172_v21 }
  0x33   :  { %vm178_vm10 = vcmp.lt.s32.totalorder %v364_v37, 4  ;;  %v179_v30 = vsel %vm175_vm6, %v159_v62, %v162_v14  ;;  %v183_v24 = vsel %vm175_vm6, %v162_v14, %v165_v15  ;;  %v187_v33 = vsel %vm175_vm6, %v165_v15, %v168_v26 }
  0x34   :  { %v98_v31 = vsel %vm96_vm8, %v97_v27, %v378_v13  ;;  %v180_v23 = vsel %vm178_vm10, %v168_v26, 2102212464  ;;  %v184_v32 = vsel %vm178_vm10, %v171_v28, 920167782  ;;  %v188_v38 = vsel %vm178_vm10, %v174_v29, 1326507024 }
  0x35   :  { %v99_v34 = vadd.s32 %v98_v31, %v94_v20  ;;  %v181_v35 = vsel %vm177_vm9, %v165_v15, %v180_v23  ;;  %v185_v36 = vsel %vm177_vm9, %v168_v26, %v184_v32  ;;  %v189_v41 = vsel %vm177_vm9, %v171_v28, %v188_v38 }
  0x36   :  { %v182_v39 = vsel %vm176_vm7, %v179_v30, %v181_v35  ;;  %v186_v40 = vsel %vm176_vm7, %v183_v24, %v185_v36  ;;  %v190_v43 = vsel %vm176_vm7, %v187_v33, %v189_v41  ;;  %v95_v62 = vadd.s32 %v377_v12, %v374_v11 }
  0x37   :  { %v100_v42 = vadd.s32 536870912, %v99_v34  ;;  %v395_v44 = vmul.u32.u64.low %v362_v25, %v186_v40  ;;  %v396_v45 = vmul.u32.u64.high %v362_v25, %v186_v40, %v395_v44  ;;  %v198_v49 = vmul.u32 %v362_v25, %v182_v39 }
  0x38   :  { %v399_v46 = vmul.u32.u64.low %v362_v25, %v190_v43  ;;  %v400_v47 = vmul.u32.u64.high %v362_v25, %v190_v43, %v399_v46  ;;  %v28_v28 = vmul.f32 0.5, %v339_v0  ;;  %vm131_vm5 = vweird.f32 %v347_v3 }
  0x39   :  { %v101_v48 = vshrl.u32 %v100_v42, 30  ;;  %v201_v51 = vadd.s32 1, %v396_v45  ;;  %vm235_vm9 = vweird.f32 %v350_v4 }
  0x3a   :  { %vm200_vm11 = vc.u32 %v400_v47, %v395_v44  ;;  %v199_v21 = vadd.s32 %v395_v44, %v400_v47  ;;  %285 = vtanh.f32 %v28_v28  ;;  %v29_v44 = vmul.f32 0.5, %v344_v1 }
  0x3b   :  { %v102_v50 = vshll.u32 %v101_v48, 30  ;;  %v202_v37 = vsel %vm200_vm11, %v201_v51, %v396_v45  ;;  %v125_v11 = vsub.s32 4, %v101_v48 }
  0x3c   :  { %v203_v53 = vadd.s32 %v202_v37, %v198_v49 }
  0x3d   :  { %v103_v52 = vsub.s32 %v99_v34, %v102_v50  ;;  %v126_v23 = vsel %vm41_vm14, %v125_v11, %v101_v48 }
  0x3e   :  { %v204_v55 = vadd.s32 536870912, %v203_v53  ;;  %v128_v36 = vsel %vm40_vm15, 0, %v126_v23 }
  0x3f   :  { %v105_v54 = vsub.s32 0, %v103_v52  ;;  %v132_v42 = vadd.s32 3, %v128_v36 }
  0x40   :  { %v205_v57 = vshrl.u32 %v204_v55, 30 }
  0x41   :  { %v263_v56 = vmin.u32 %v105_v54, %v103_v52  ;;  %v133_v47 = vand.u32 3, %v132_v42 }
  0x42   :  { %v206_v59 = vshll.u32 %v205_v57, 30  ;;  %v229_v41 = vsub.s32 4, %v205_v57 }
  0x43   :  { %v107_v58 = vclz %v263_v56  ;;  %vm138_vm2 = vcmp.eq.s32.totalorder %v133_v47, 2  ;;  %vm135_vm3 = vcmp.eq.s32.totalorder %v133_v47, 0  ;;  %vm134_vm4 = vcmp.lt.s32.totalorder %v133_v47, 2 }
  0x44   :  { %v207_v61 = vsub.s32 %v203_v53, %v206_v59  ;;  %v230_v46 = vsel %vm145_vm0, %v229_v41, %v205_v57  ;;  %v286_v49 = vpop.eup %285 }
  0x45   :  { %v264_v60 = vadd.s32 4294967294, %v107_v58  ;;  %v232_v51 = vsel %vm417_vm1, 0, %v230_v46  ;;  %v32_v55 = vadd.f32 1.0, %v286_v49  ;;  %v247_v58 = vstv %s421_s1 }
  0x46   :  { %v209_v63 = vsub.s32 0, %v207_v61  ;;  %v236_v53 = vadd.s32 3, %v232_v51 }
  0x47   :  { %vm265_vm12 = vcmp.lt.s32.totalorder %v264_v60, 0 }
  0x48   :  { %v110_v25 = vsel %vm265_vm12, 0, %v264_v60  ;;  %v267_v9 = vmin.u32 %v209_v63, %v207_v61  ;;  %v237_v60 = vand.u32 3, %v236_v53 }
  0x49   :  { %v111_v2 = vsub.s32 32, %v110_v25  ;;  %v112_v6 = vshll.u32 %v103_v52, %v110_v25  ;;  %v115_v8 = vsub.s32 4294967266, %v110_v25 }
  0x4a   :  { %v211_v14 = vclz %v267_v9  ;;  %vm242_vm6 = vcmp.eq.s32.totalorder %v237_v60, 2  ;;  %vm239_vm7 = vcmp.eq.s32.totalorder %v237_v60, 0  ;;  %vm238_vm8 = vcmp.lt.s32.totalorder %v237_v60, 2 }
  0x4b   :  { %v113_v10 = vshrl.u32 %v95_v62, %v111_v2  ;;  %v116_v13 = vadd.s32 127, %v115_v8  ;;  %v34_v62 = vmul.f32 0.5, %v32_v55 }
  0x4c   :  { %v268_v17 = vadd.s32 4294967294, %v211_v14 }
  0x4d   :  { %v114_v15 = vor.u32 %v113_v10, %v112_v6  ;;  %v117_v16 = vshll.u32 %v116_v13, 23 }
  0x4e   :  { %vm269_vm13 = vcmp.lt.s32.totalorder %v268_v17, 0 }
  0x4f   :  { %v118_v18 = vor.u32 4788187, %v117_v16  ;;  %v121_v19 = vcvt.s32.f32 %v114_v15  ;;  %v214_v12 = vsel %vm269_vm13, 0, %v268_v17 }
  0x50   :  { %v215_v20 = vsub.s32 32, %v214_v12  ;;  %v216_v26 = vshll.u32 %v207_v61, %v214_v12  ;;  %v219_v27 = vsub.s32 4294967266, %v214_v12 }
  0x51   :  { %v119_v22 = vand.u32 2147483647, %v118_v18 }
  0x52   :  { %v217_v30 = vshrl.u32 %v199_v21, %v215_v20  ;;  %v220_v24 = vadd.s32 127, %v219_v27 }
  0x53   :  { %v122_v29 = vmul.f32 %v121_v19, %v119_v22 }
  0x54   :  { %v218_v32 = vor.u32 %v217_v30, %v216_v26  ;;  %v221_v33 = vshll.u32 %v220_v24, 23 }
  0x55   :  { %v123_v31 = vxor.u32 2147483648, %v122_v29 }
  0x56   :  { %v222_v38 = vor.u32 4788187, %v221_v33  ;;  %v225_v39 = vcvt.s32.f32 %v218_v32 }
  0x57   :  { %v124_v34 = vsel %vm41_vm14, %v123_v31, %v122_v29 }
  0x58   :  { %v127_v35 = vsel %vm40_vm15, %v347_v3, %v124_v34  ;;  %v223_v40 = vand.u32 2147483647, %v222_v38 }
  0x59   :  { %287 = vcosq.f32 %v127_v35 }
  0x5a   :  { %289 = vsinq.f32 %v127_v35  ;;  %v226_v43 = vmul.f32 %v225_v39, %v223_v40 }
  0x5b   :  { %291 = vtanh.f32 %v29_v44 }
  0x5c   :  { %v227_v45 = vxor.u32 2147483648, %v226_v43 }
  0x5e   :  { %v228_v48 = vsel %vm145_vm0, %v227_v45, %v226_v43 }
  0x5f   :  { %v231_v50 = vsel %vm417_vm1, %v350_v4, %v228_v48 }
  0x60   :  { %293 = vcosq.f32 %v231_v50 }
  0x61   :  { %295 = vsinq.f32 %v231_v50 }
  0x63   :  { %v288_v7 = vpop.eup %287 }
  0x64   :  { %v290_v52 = vpop.eup %289  ;;  %v139_v37 = vxor.u32 2147483648, %v288_v7 }
  0x65   :  { %v136_v54 = vxor.u32 2147483648, %v290_v52  ;;  %v292_v63 = vpop.eup %291 }
  0x66   :  { %v140_v56 = vsel %vm138_vm2, %v139_v37, %v290_v52  ;;  %v33_v3 = vadd.f32 1.0, %v292_v63 }
  0x67   :  { %v137_v57 = vsel %vm135_vm3, %v288_v7, %v136_v54 }
  0x68   :  { %v141_v59 = vsel %vm134_vm4, %v137_v57, %v140_v56  ;;  %v35_v18 = vmul.f32 0.5, %v33_v3 }
  0x69   :  { %v142_v61 = vsel %vm131_vm5, nan, %v141_v59 }
  0x6a   :  { %v248_v25 = vmul.f32 %v247_v58, %v142_v61  ;;  %v294_v2 = vpop.eup %293 }
  0x6b   :  { %v296_v8 = vpop.eup %295  ;;  %v243_v9 = vxor.u32 2147483648, %v294_v2 }
  0x6c   :  { %v250_v6 = vadd.f32 %v248_v25, %v339_v0  ;;  %v240_v10 = vxor.u32 2147483648, %v296_v8 }
  0x6d   :  { %v244_v14 = vsel %vm242_vm6, %v243_v9, %v296_v8 }
  0x6e   :  { %v252_v13 = vmul.f32 %v250_v6, %v34_v62  ;;  %v241_v15 = vsel %vm239_vm7, %v294_v2, %v240_v10 }
  0x6f   :  { %v245_v16 = vsel %vm238_vm8, %v241_v15, %v244_v14 }
  0x70   :  { %254 = vst [vmem:[%s441_s2] sm:$0xff] %v252_v13  ;;  %v246_v17 = vsel %vm235_vm9, nan, %v245_v16 }
  0x71   :  { %v249_v19 = vmul.f32 %v247_v58, %v246_v17 }
  0x73   :  { %v251_v0 = vadd.f32 %v249_v19, %v344_v1 }
  0x75   :  { %v253_v21 = vmul.f32 %v251_v0, %v35_v18 }
  0x77   :  { %255 = vst [vmem:[%s441_s2 + $0x8] sm:$0xff] %v253_v21 }
  0x78   :  { %260 = vsyncpa [#allocation3], 1 }

</bundles_post_ra>
